<compile_context>
chip_gen: v6e
topology: v6e:2x2x1
jax: 0.10.0
libtpu: 0.0.40
codegen_flags: <defaults>
</compile_context>

<pallas_src>
import functools

import jax
import jax.numpy as jnp
from jax.experimental import pallas as pl
from jax.experimental.pallas import tpu as pltpu


# ----------------------------------------------------------------------------
# Kernel 1: temporal mean pooling, streamed over 8-aligned batch blocks.
# ----------------------------------------------------------------------------
def _pool_kernel(v_ref, a_ref, vm_ref, am_ref, *, t_v: int, t_a: int):
    # Promote only the current block to f32; the full [B,T,D] tensors never are.
    vm_ref[...] = jnp.sum(v_ref[...].astype(jnp.float32), axis=1) * (1.0 / t_v)
    am_ref[...] = jnp.sum(a_ref[...].astype(jnp.float32), axis=1) * (1.0 / t_a)


# ----------------------------------------------------------------------------
# Kernel 2: normalization + [B,B] similarity + symmetric cross-entropy.
# ----------------------------------------------------------------------------
def _finalize_kernel(vm_ref, am_ref, out_ref, *, temperature: float,
                     use_bf16_matmul: bool):
    inv_temp = 1.0 / temperature
    eps = 1e-12

    vm = vm_ref[...]                     # [B, D] f32 pooled means
    am = am_ref[...]

    # F.normalize(p=2): x / max(||x||, eps) == x * rsqrt(max(||x||^2, eps^2)).
    # rsqrt runs on the EUP; 1/temperature folded into the video side only, so
    # the [B,B] similarity never sees a divide.
    v_ss = jnp.sum(vm * vm, axis=1, keepdims=True)
    a_ss = jnp.sum(am * am, axis=1, keepdims=True)
    vn = vm * (jax.lax.rsqrt(jnp.maximum(v_ss, eps * eps)) * inv_temp)
    an = am * jax.lax.rsqrt(jnp.maximum(a_ss, eps * eps))

    # sim[i, j] = <vn[i], an[j]>  -- contract dim 1 of both, no explicit an.T.
    dnums = (((1,), (1,)), ((), ()))
    if use_bf16_matmul:
        sim = jax.lax.dot_general(vn.astype(jnp.bfloat16), an.astype(jnp.bfloat16),
                                  dnums, preferred_element_type=jnp.float32)
    else:
        sim = jax.lax.dot_general(vn, an, dnums,
                                  preferred_element_type=jnp.float32)

    # Matched-pair logits directly (O(B*D) elementwise, f32), no [B,B] iota mask.
    diag = jnp.sum(vn * an, axis=1)                      # [B]

    if inv_temp <= 25.0:
        # |sim| <= 1/temperature for L2-normalized embeddings, so one static
        # shift is numerically safe and exp() is computed ONCE for both CE
        # directions (halves the 2*B^2 transcendental pass).
        e = jnp.exp(sim - inv_temp)
        lse_row = jnp.log(jnp.sum(e, axis=1)) + inv_temp  # v2a direction
        lse_col = jnp.log(jnp.sum(e, axis=0)) + inv_temp  # a2v direction
    else:
        # Very small temperature: revert to per-row / per-column max shifts.
        m_row = jnp.max(sim, axis=1)
        lse_row = jnp.log(jnp.sum(jnp.exp(sim - m_row[:, None]), axis=1)) + m_row
        m_col = jnp.max(sim, axis=0)
        lse_col = jnp.log(jnp.sum(jnp.exp(sim - m_col[None, :]), axis=0)) + m_col

    b = sim.shape[0]
    # 0.5 * (mean(lse_row - diag) + mean(lse_col - diag))
    loss = 0.5 * (jnp.sum(lse_row) + jnp.sum(lse_col)) / b - jnp.sum(diag) / b
    out_ref[0, 0] = loss


# ----------------------------------------------------------------------------
# Host-side helpers.
# ----------------------------------------------------------------------------
def _vmem_capacity_bytes() -> int:
    """Per-core VMEM capacity; conservative 64 MiB fallback (v7x) if unknown."""
    try:
        info = pltpu.get_tpu_info()
        cap = getattr(info, "vmem_capacity_bytes", None)
        if cap:
            return int(cap)
    except Exception:
        pass
    return 64 << 20


def _pick_block_b(batch: int, per_sample_bytes: int, target_bytes: int) -> int:
    """Batch block: multiple of 8 (f32 sublane), input slab ~<= target_bytes."""
    if batch <= 8:
        return batch                       # single full block (full-dim is legal)
    tb = target_bytes // max(per_sample_bytes, 1)
    tb = max(8, min(tb, batch))
    tb = (tb // 8) * 8                     # 8-aligned -> no masked sublane stores
    return tb


def contrastive_loss(video_emb: jax.Array,
                     audio_emb: jax.Array,
                     temperature: float = 0.07,
                     margin: float = 0.2) -> jax.Array:
    """Pallas equivalent of ContrastiveLoss.forward.

    Args:
      video_emb: [B, T_v, D]
      audio_emb: [B, T_a, D]
    Returns:
      scalar loss (float32)
    """
    # NOTE: `margin` is unused in the reference forward pass as well.
    del margin
    B, T_v, D = video_emb.shape
    Ba, T_a, Da = audio_emb.shape
    assert Ba == B and Da == D

    itemsize = max(video_emb.dtype.itemsize, audio_emb.dtype.itemsize)
    vmem_cap = _vmem_capacity_bytes()
    vmem_limit_cap = int(min(vmem_cap * 7 // 8, 112 << 20))   # 56 MiB v7x, 112 MiB v5e/v6e

    # Generation-aware streaming block: ~VMEM/8 per slab (<=16 MiB).
    target_bytes = int(min(16 << 20, vmem_cap // 8))
    per_sample = (T_v + T_a) * D * itemsize
    tb = _pick_block_b(B, per_sample, target_bytes)
    n_blocks = pl.cdiv(B, tb)

    # ---------------- pooling pass (parallel over batch blocks) -------------
    pool_kernel = functools.partial(_pool_kernel, t_v=T_v, t_a=T_a)
    pool_vmem = (2 * tb * (T_v + T_a) * D * itemsize      # double-buffered inputs
                 + 2 * 2 * tb * D * 4                     # double-buffered outputs
                 + (2 << 20))
    pool_vmem = int(min(max(pool_vmem, 16 << 20), vmem_limit_cap))

    pool_spec = pltpu.PrefetchScalarGridSpec(
        num_scalar_prefetch=0,
        grid=(n_blocks,),
        in_specs=[
            pl.BlockSpec((tb, T_v, D), lambda i: (i, 0, 0)),
            pl.BlockSpec((tb, T_a, D), lambda i: (i, 0, 0)),
        ],
        out_specs=[
            pl.BlockSpec((tb, D), lambda i: (i, 0)),
            pl.BlockSpec((tb, D), lambda i: (i, 0)),
        ],
    )
    vm, am = pl.pallas_call(
        pool_kernel,
        out_shape=(jax.ShapeDtypeStruct((B, D), jnp.float32),
                   jax.ShapeDtypeStruct((B, D), jnp.float32)),
        grid_spec=pool_spec,
        compiler_params=pltpu.CompilerParams(
            dimension_semantics=("parallel",),       # megacore-shardable on v7x
            vmem_limit_bytes=pool_vmem,
        ),
    )(video_emb, audio_emb)

    # ---------------- finalize pass (tiny O(B^2)) ----------------------------
    use_bf16_matmul = (B >= 1024 and D >= 512)
    fin_kernel = functools.partial(
        _finalize_kernel, temperature=float(temperature),
        use_bf16_matmul=use_bf16_matmul)
    fin_vmem = (2 * 2 * B * D * 4          # double-buffered pooled inputs
                + 4 * B * B * 4            # sim / shared exp / lse temporaries
                + (2 << 20))
    fin_vmem = int(min(max(fin_vmem, 16 << 20), vmem_limit_cap))

    fin_spec = pltpu.PrefetchScalarGridSpec(
        num_scalar_prefetch=0,
        grid=(1,),
        in_specs=[
            pl.BlockSpec((B, D), lambda i: (0, 0)),
            pl.BlockSpec((B, D), lambda i: (0, 0)),
        ],
        out_specs=pl.BlockSpec(memory_space=pltpu.SMEM),
    )
    out = pl.pallas_call(
        fin_kernel,
        out_shape=jax.ShapeDtypeStruct((1, 1), jnp.float32),
        grid_spec=fin_spec,
        compiler_params=pltpu.CompilerParams(
            dimension_semantics=("arbitrary",),
            vmem_limit_bytes=fin_vmem,
        ),
    )(vm, am)

    # TODO(synk): for global-batch B in the low thousands (earlier on v7x's
    # 64 MiB VMEM), stream the [B,B] similarity flash-style (blocked online LSE
    # over column tiles) instead of materializing it in the finalize kernel.
    return out[0, 0]


# ----------------------------------------------------------------------------
# Pure-JAX reference mirroring the PyTorch module (for sanity check).
# ----------------------------------------------------------------------------
def _reference_loss(video_emb, audio_emb, temperature=0.07):
    v = jnp.mean(video_emb.astype(jnp.float32), axis=1)
    a = jnp.mean(audio_emb.astype(jnp.float32), axis=1)
    v = v / jnp.maximum(jnp.linalg.norm(v, axis=1, keepdims=True), 1e-12)
    a = a / jnp.maximum(jnp.linalg.norm(a, axis=1, keepdims=True), 1e-12)
    sim = (v @ a.T) / temperature
    B = sim.shape[0]
    labels = jnp.arange(B)

    def ce(logits):
        lse = jax.scipy.special.logsumexp(logits, axis=1)
        return jnp.mean(lse - logits[jnp.arange(B), labels])

    return 0.5 * (ce(sim) + ce(sim.T))


if __name__ == "__main__":
    # Small shapes implied by the module: B batch, T_v / T_a time steps, D hidden.
    B, T_v, T_a, D = 8, 8, 8, 32
    key = jax.random.PRNGKey(0)
    kv, ka = jax.random.split(key)
    video_emb = jax.random.normal(kv, (B, T_v, D), dtype=jnp.float32)
    audio_emb = jax.random.normal(ka, (B, T_a, D), dtype=jnp.float32)

    loss = contrastive_loss(video_emb, audio_emb, temperature=0.07)
    loss = jax.block_until_ready(loss)

    ref = _reference_loss(video_emb, audio_emb, temperature=0.07)
    assert jnp.allclose(loss, ref, atol=1e-4, rtol=1e-4), (loss, ref)

    print("KERNEL_OK")
</pallas_src>

<mosaic_0001>
module attributes {stable_mosaic.version = 11 : i64} {
  func.func @_pool_kernel(%arg0: i32, %arg1: memref<8x8x32xf32, #tpu.memory_space<vmem>>, %arg2: memref<8x8x32xf32, #tpu.memory_space<vmem>>, %arg3: memref<8x32xf32, #tpu.memory_space<vmem>>, %arg4: memref<8x32xf32, #tpu.memory_space<vmem>>) attributes {dimension_semantics = [#tpu.dimension_semantics<parallel>], iteration_bounds = array<i64: 1>, scalar_prefetch = 0 : i64, scratch_operands = 0 : i64, tpu.core_type = #tpu.core_type<tc>, window_params = [{transform_indices = @transform_0, window_bounds = array<i64: 8, 8, 32>}, {transform_indices = @transform_1, window_bounds = array<i64: 8, 8, 32>}, {transform_indices = @transform_2, window_bounds = array<i64: 8, 32>}, {transform_indices = @transform_3, window_bounds = array<i64: 8, 32>}]} {
    %c0 = arith.constant 0 : index
    %c0_0 = arith.constant 0 : index
    %c0_1 = arith.constant 0 : index
    %0 = vector.load %arg1[%c0, %c0_0, %c0_1] : memref<8x8x32xf32, #tpu.memory_space<vmem>>, vector<8x8x32xf32>
    %cst = arith.constant dense<0.000000e+00> : vector<8x32xf32>
    %1 = vector.multi_reduction <add>, %0, %cst [1] : vector<8x8x32xf32> to vector<8x32xf32>
    %cst_2 = arith.constant 1.250000e-01 : f32
    %2 = vector.broadcast %cst_2 : f32 to vector<8x32xf32>
    %3 = arith.mulf %1, %2 : vector<8x32xf32>
    %c0_3 = arith.constant 0 : index
    %c0_4 = arith.constant 0 : index
    %4 = vector.load %arg3[%c0_3, %c0_4] : memref<8x32xf32, #tpu.memory_space<vmem>>, vector<8x32xf32>
    tpu.vector_store %arg3[%c0_3, %c0_4], %3 {strides = array<i32>} : memref<8x32xf32, #tpu.memory_space<vmem>>, vector<8x32xf32>,
    %c0_5 = arith.constant 0 : index
    %c0_6 = arith.constant 0 : index
    %c0_7 = arith.constant 0 : index
    %5 = vector.load %arg2[%c0_5, %c0_6, %c0_7] : memref<8x8x32xf32, #tpu.memory_space<vmem>>, vector<8x8x32xf32>
    %cst_8 = arith.constant dense<0.000000e+00> : vector<8x32xf32>
    %6 = vector.multi_reduction <add>, %5, %cst_8 [1] : vector<8x8x32xf32> to vector<8x32xf32>
    %cst_9 = arith.constant 1.250000e-01 : f32
    %7 = vector.broadcast %cst_9 : f32 to vector<8x32xf32>
    %8 = arith.mulf %6, %7 : vector<8x32xf32>
    %c0_10 = arith.constant 0 : index
    %c0_11 = arith.constant 0 : index
    %9 = vector.load %arg4[%c0_10, %c0_11] : memref<8x32xf32, #tpu.memory_space<vmem>>, vector<8x32xf32>
    tpu.vector_store %arg4[%c0_10, %c0_11], %8 {strides = array<i32>} : memref<8x32xf32, #tpu.memory_space<vmem>>, vector<8x32xf32>,
    return
  }
  func.func @transform_0(%arg0: i32) -> (i32, i32, i32) {
    %c0_i32 = arith.constant 0 : i32
    %c0_i32_0 = arith.constant 0 : i32
    %c0_i32_1 = arith.constant 0 : i32
    return %arg0, %c0_i32, %c0_i32_0 : i32, i32, i32
  }
  func.func @transform_1(%arg0: i32) -> (i32, i32, i32) {
    %c0_i32 = arith.constant 0 : i32
    %c0_i32_0 = arith.constant 0 : i32
    %c0_i32_1 = arith.constant 0 : i32
    return %arg0, %c0_i32, %c0_i32_0 : i32, i32, i32
  }
  func.func @transform_2(%arg0: i32) -> (i32, i32) {
    %c0_i32 = arith.constant 0 : i32
    %c0_i32_0 = arith.constant 0 : i32
    return %arg0, %c0_i32 : i32, i32
  }
  func.func @transform_3(%arg0: i32) -> (i32, i32) {
    %c0_i32 = arith.constant 0 : i32
    %c0_i32_0 = arith.constant 0 : i32
    return %arg0, %c0_i32 : i32, i32
  }
}

</mosaic_0001>

<bundles_post_ra>
// kernel: tpu_custom_call.1
= control target key start
LH: loop header
LB: loop body
LE: loop exit
PB: predicated region body
PF: predicated region fallthrough
CT: control target
= control target key end

     0   :  { %9 = vsyncpa [#allocation3], 0  ;;  %s423_s0 = inlined_call_operand.hbm [shape: f32[8,8,32], index: 0, kind: input, shape index: {}]   ;;  %s424_s1 = inlined_call_operand.hbm [shape: f32[8,8,32], index: 1, kind: input, shape index: {}]   ;;  %s425_s2 = inlined_call_operand.hbm [shape: f32[8,32], index: 2, kind: output, shape index: {0}]   ;;  %s426_s3 = inlined_call_operand.hbm [shape: f32[8,32], index: 3, kind: output, shape index: {1}]  }
   0x1   :  { %10 = vsyncpa [#allocation6], 0 }
   0x2   :  { %11 = vsyncpa [#allocation4], 0 }
   0x3   :  { %12 = vsyncpa [#allocation9], 0  ;;  %s353_s12 = smov [#allocation2]  }
   0x4   :  { %s18_s13 = sshll.u32 %s353_s12, 4  ;;  %s19_s13 = int_to_ptr.vmem [resolvable:$true] %s18_s13 }
   0x5   :  { %s273_s14 = scalar_lea.vmem %s19_s13, 1024  ;;  %p278_p1 = scmp.lt.s32.totalorder %s19_s13, %s19_s13 }
   0x6   :  { %p274_p0 = scmp.ne.s32.totalorder %s19_s13, %s273_s14  ;;  %p279_p2 = scmp.lt.s32.totalorder %s273_s14, %s273_s14 }
   0x8   :  { %p280_p3 = por %p279_p2, %p278_p1 }
   0xa   :  { %p281_p4 = pnand %p280_p3, %p274_p0 }
   0xc   :  { %284 = shalt.err (!%p281_p4)
}
   0xd   :  { %s354_s15 = smov 128   ;;  %s355_s16 = smov 8  }
   0xe   :  { %24 = dma.hbm_to_vmem [thread:$0]  %s423_s0, 1024, %s19_s13, [#allocation3], %s354_s15, %s354_s15, %s355_s16  }
   0xf   :  { %s356_s19 = smov [#allocation5]  }
  0x10   :  { %s30_s20 = sshll.u32 %s356_s19, 4  ;;  %s31_s20 = int_to_ptr.vmem [resolvable:$true] %s30_s20 }
  0x11   :  { %s293_s21 = scalar_lea.vmem %s31_s20, 1024  ;;  %p298_p6 = scmp.lt.s32.totalorder %s31_s20, %s31_s20 }
  0x12   :  { %p294_p5 = scmp.ne.s32.totalorder %s31_s20, %s293_s21  ;;  %p299_p7 = scmp.lt.s32.totalorder %s293_s21, %s293_s21 }
  0x14   :  { %p300_p8 = por %p299_p7, %p298_p6 }
  0x16   :  { %p301_p9 = pnand %p300_p8, %p294_p5 }
  0x18   :  { %304 = shalt.err (!%p301_p9)
}
  0x19   :  { %36 = dma.hbm_to_vmem [thread:$0]  %s424_s1, 1024, %s31_s20, [#allocation6], %s354_s15, %s354_s15, %s355_s16  }
  0x1a   :  { %345 = dma.done.wait [#allocation3], 1024  }
  0x1b   :  { %346 = vsyncadd [#allocation3], 4294966272 }
  0x1c   :  { %347 = dma.done.wait [#allocation6], 1024  }
  0x1d   :  { %348 = vsyncadd [#allocation6], 4294966272  ;;  %vm51_vm0 = vcmask 261120   ;;  %v43_v0 = vld [vmem:[#allocation2] sm:$0xff]  ;;  %v44_v1 = vld [vmem:[#allocation2 + $0x8] sm:$0xff]  ;;  %vm124_vm1 = vcmask 1041409  }
  0x1e   :  { %v45_v2 = vld [vmem:[#allocation2 + $0x10] sm:$0xff]  ;;  %v46_v3 = vld [vmem:[#allocation2 + $0x18] sm:$0xff]  ;;  %v47_v4 = vld [vmem:[#allocation2 + $0x20] sm:$0xff]  ;;  %v52_v6 = vsel %vm51_vm0, %v43_v0, 0.0  ;;  %v59_v7 = vsel %vm51_vm0, %v44_v1, 0.0  ;;  %vm126_vm2 = vcmask 1042434  }
  0x1f   :  { %v48_v5 = vld [vmem:[#allocation2 + $0x28] sm:$0xff]  ;;  %v66_v8 = vsel %vm51_vm0, %v45_v2, 0.0  ;;  %v49_v9 = vld [vmem:[#allocation2 + $0x30] sm:$0xff]  ;;  %v50_v10 = vld [vmem:[#allocation2 + $0x38] sm:$0xff]  ;;  %v53_v11 = vrot.slane %v52_v6, 4  ;;  %v60_v12 = vrot.slane %v59_v7, 4 }
  0x20   :  { %v67_v13 = vrot.slane %v66_v8, 4  ;;  %v73_v14 = vsel %vm51_vm0, %v46_v3, 0.0  ;;  %v80_v16 = vsel %vm51_vm0, %v47_v4, 0.0  ;;  %v87_v17 = vsel %vm51_vm0, %v48_v5, 0.0  ;;  %v140_v59 = vld [vmem:[#allocation5] sm:$0xff]  ;;  %v141_v60 = vld [vmem:[#allocation5 + $0x8] sm:$0xff] }
  0x21   :  { %v74_v15 = vrot.slane %v73_v14, 4  ;;  %v94_v18 = vsel %vm51_vm0, %v49_v9, 0.0  ;;  %v54_v19 = vadd.f32 %v53_v11, %v52_v6  ;;  %v61_v20 = vadd.f32 %v60_v12, %v59_v7  ;;  %v142_v5 = vld [vmem:[#allocation5 + $0x10] sm:$0xff]  ;;  %s357_s0 = smov [#allocation7]  }
  0x22   :  { %v68_v21 = vadd.f32 %v67_v13, %v66_v8  ;;  %v81_v22 = vrot.slane %v80_v16, 4  ;;  %v88_v24 = vrot.slane %v87_v17, 4  ;;  %v95_v25 = vrot.slane %v94_v18, 4  ;;  %v143_v8 = vld [vmem:[#allocation5 + $0x18] sm:$0xff]  ;;  %s235_s1 = sshll.u32 %s357_s0, 4  ;;  %s236_s1 = int_to_ptr.vmem [resolvable:$true] %s235_s1 }
  0x23   :  { %v75_v23 = vadd.f32 %v74_v15, %v73_v14  ;;  %v101_v26 = vsel %vm51_vm0, %v50_v10, 0.0  ;;  %v55_v27 = vrot.slane %v54_v19, 2  ;;  %v62_v28 = vrot.slane %v61_v20, 2  ;;  %s305_s24 = scalar_lea.vmem %s236_s1, 128  ;;  %p310_p11 = scmp.lt.s32.totalorder %s236_s1, %s236_s1 }
  0x24   :  { %v69_v29 = vrot.slane %v68_v21, 2  ;;  %v82_v30 = vadd.f32 %v81_v22, %v80_v16  ;;  %v89_v32 = vadd.f32 %v88_v24, %v87_v17  ;;  %v96_v33 = vadd.f32 %v95_v25, %v94_v18  ;;  %v144_v16 = vld [vmem:[#allocation5 + $0x20] sm:$0xff]  ;;  %v145_v17 = vld [vmem:[#allocation5 + $0x28] sm:$0xff]  ;;  %p306_p10 = scmp.ne.s32.totalorder %s236_s1, %s305_s24  ;;  %p311_p12 = scmp.lt.s32.totalorder %s305_s24, %s305_s24 }
  0x25   :  { %v76_v31 = vrot.slane %v75_v23, 2  ;;  %v102_v34 = vrot.slane %v101_v26, 4  ;;  %vm128_vm3 = vcmask 1043459   ;;  %v56_v35 = vadd.f32 %v55_v27, %v54_v19 }
  0x26   :  { %v63_v36 = vadd.f32 %v62_v28, %v61_v20  ;;  %v70_v37 = vadd.f32 %v69_v29, %v68_v21  ;;  %v83_v38 = vrot.slane %v82_v30, 2  ;;  %vm130_vm4 = vcmask 1044484   ;;  %p312_p13 = por %p311_p12, %p310_p11 }
  0x27   :  { %v77_v39 = vadd.f32 %v76_v31, %v75_v23  ;;  %v90_v40 = vrot.slane %v89_v32, 2  ;;  %v97_v41 = vrot.slane %v96_v33, 2  ;;  %v103_v42 = vadd.f32 %v102_v34, %v101_v26  ;;  %v146_v26 = vld [vmem:[#allocation5 + $0x30] sm:$0xff] }
  0x28   :  { %vm132_vm5 = vcmask 1045509   ;;  %v57_v43 = vrot.slane %v56_v35, 1  ;;  %v64_v44 = vrot.slane %v63_v36, 1  ;;  %v71_v45 = vrot.slane %v70_v37, 1  ;;  %p313_p0 = pnand %p312_p13, %p306_p10 }
  0x29   :  { %v84_v46 = vadd.f32 %v83_v38, %v82_v30  ;;  %vm134_vm6 = vcmask 1046534   ;;  %v78_v47 = vrot.slane %v77_v39, 1  ;;  %v91_v48 = vadd.f32 %v90_v40, %v89_v32 }
  0x2a   :  { %v98_v49 = vadd.f32 %v97_v41, %v96_v33  ;;  %v104_v50 = vrot.slane %v103_v42, 2  ;;  %vm136_vm7 = vcmask 1047559   ;;  %v58_v51 = vadd.f32 %v57_v43, %v56_v35  ;;  %v147_v35 = vld [vmem:[#allocation5 + $0x38] sm:$0xff] }
  0x2b   :  { %v65_v52 = vadd.f32 %v64_v44, %v63_v36  ;;  %v72_v53 = vadd.f32 %v71_v45, %v70_v37  ;;  %v85_v54 = vrot.slane %v84_v46, 1  ;;  %v79_v55 = vadd.f32 %v78_v47, %v77_v39 }
  0x2c   :  { %v92_v56 = vrot.slane %v91_v48, 1  ;;  %v99_v57 = vrot.slane %v98_v49, 1  ;;  %v105_v58 = vadd.f32 %v104_v50, %v103_v42  ;;  %v108_v62 = vmul.f32 0.125, %v58_v51 }
  0x2d   :  { %v86_v61 = vadd.f32 %v85_v54, %v84_v46  ;;  %v109_v63 = vmul.f32 0.125, %v65_v52  ;;  %v110_v0 = vmul.f32 0.125, %v72_v53  ;;  %v111_v4 = vmul.f32 0.125, %v79_v55 }
  0x2e   :  { %v93_v1 = vadd.f32 %v92_v56, %v91_v48  ;;  %v100_v2 = vadd.f32 %v99_v57, %v98_v49  ;;  %v106_v3 = vrot.slane %v105_v58, 1  ;;  %v148_v9 = vsel %vm51_vm0, %v140_v59, 0.0 }
  0x2f   :  { %v112_v6 = vmul.f32 0.125, %v86_v61  ;;  %v125_v7 = vsel %vm124_vm1, %v109_v63, %v108_v62  ;;  %v155_v10 = vsel %vm51_vm0, %v141_v60, 0.0  ;;  %v149_v18 = vrot.slane %v148_v9, 4 }
  0x30   :  { %v107_v11 = vadd.f32 %v106_v3, %v105_v58  ;;  %v113_v12 = vmul.f32 0.125, %v93_v1  ;;  %v114_v13 = vmul.f32 0.125, %v100_v2  ;;  %v127_v14 = vsel %vm126_vm2, %v110_v0, %v125_v7 }
  0x31   :  { %v129_v15 = vsel %vm128_vm3, %v111_v4, %v127_v14  ;;  %v156_v19 = vrot.slane %v155_v10, 4  ;;  %v162_v20 = vsel %vm51_vm0, %v142_v5, 0.0  ;;  %v169_v24 = vsel %vm51_vm0, %v143_v8, 0.0 }
  0x32   :  { %v115_v21 = vmul.f32 0.125, %v107_v11  ;;  %v131_v22 = vsel %vm130_vm4, %v112_v6, %v129_v15  ;;  %v163_v23 = vrot.slane %v162_v20, 4  ;;  %v150_v27 = vadd.f32 %v149_v18, %v148_v9 }
  0x33   :  { %v133_v25 = vsel %vm132_vm5, %v113_v12, %v131_v22  ;;  %v157_v28 = vadd.f32 %v156_v19, %v155_v10  ;;  %v170_v29 = vrot.slane %v169_v24, 4  ;;  %v176_v32 = vsel %vm51_vm0, %v144_v16, 0.0 }
  0x34   :  { %v135_v30 = vsel %vm134_vm6, %v114_v13, %v133_v25  ;;  %v164_v31 = vadd.f32 %v163_v23, %v162_v20  ;;  %v183_v33 = vsel %vm51_vm0, %v145_v17, 0.0  ;;  %v151_v36 = vrot.slane %v150_v27, 2 }
  0x35   :  { %v137_v34 = vsel %vm136_vm7, %v115_v21, %v135_v30  ;;  %v158_v37 = vrot.slane %v157_v28, 2  ;;  %v171_v38 = vadd.f32 %v170_v29, %v169_v24  ;;  %v177_v40 = vrot.slane %v176_v32, 4 }
  0x36   :  { %139 = vst.msk [vmem:[#allocation7] sm:$0xff] %vm51_vm0, %v137_v34  ;;  %v165_v39 = vrot.slane %v164_v31, 2  ;;  %v184_v41 = vrot.slane %v183_v33, 4  ;;  %v190_v42 = vsel %vm51_vm0, %v146_v26, 0.0  ;;  %v152_v43 = vadd.f32 %v151_v36, %v150_v27 }
  0x37   :  { %v159_v44 = vadd.f32 %v158_v37, %v157_v28  ;;  %v172_v45 = vrot.slane %v171_v38, 2  ;;  %v191_v46 = vrot.slane %v190_v42, 4 }
  0x38   :  { %316 = shalt.err (!%p313_p0)
}
  0x39   :  { %238 = dma.vmem_to_hbm [thread:$0]  %s236_s1, 128, %s425_s2, [#allocation4]   ;;  %v166_v47 = vadd.f32 %v165_v39, %v164_v31  ;;  %v178_v48 = vadd.f32 %v177_v40, %v176_v32  ;;  %v185_v49 = vadd.f32 %v184_v41, %v183_v33  ;;  %v197_v50 = vsel %vm51_vm0, %v147_v35, 0.0 }
  0x3a   :  { %v153_v51 = vrot.slane %v152_v43, 1  ;;  %v160_v52 = vrot.slane %v159_v44, 1  ;;  %v173_v53 = vadd.f32 %v172_v45, %v171_v38  ;;  %v192_v54 = vadd.f32 %v191_v46, %v190_v42  ;;  %s358_s2 = smov [#allocation8]  }
  0x3b   :  { %v167_v55 = vrot.slane %v166_v47, 1  ;;  %v179_v56 = vrot.slane %v178_v48, 2  ;;  %v186_v57 = vrot.slane %v185_v49, 2  ;;  %v198_v58 = vrot.slane %v197_v50, 4  ;;  %s245_s27 = sshll.u32 %s358_s2, 4  ;;  %s246_s27 = int_to_ptr.vmem [resolvable:$true] %s245_s27 }
  0x3c   :  { %v154_v59 = vadd.f32 %v153_v51, %v152_v43  ;;  %v161_v60 = vadd.f32 %v160_v52, %v159_v44  ;;  %v174_v61 = vrot.slane %v173_v53, 1  ;;  %v193_v62 = vrot.slane %v192_v54, 2  ;;  %s325_s28 = scalar_lea.vmem %s246_s27, 128  ;;  %p330_p2 = scmp.lt.s32.totalorder %s246_s27, %s246_s27 }
  0x3d   :  { %v168_v63 = vadd.f32 %v167_v55, %v166_v47  ;;  %v180_v0 = vadd.f32 %v179_v56, %v178_v48  ;;  %v187_v1 = vadd.f32 %v186_v57, %v185_v49  ;;  %v199_v2 = vadd.f32 %v198_v58, %v197_v50  ;;  %p326_p1 = scmp.ne.s32.totalorder %s246_s27, %s325_s28  ;;  %p331_p3 = scmp.lt.s32.totalorder %s325_s28, %s325_s28 }
  0x3e   :  { %v175_v3 = vadd.f32 %v174_v61, %v173_v53  ;;  %v194_v4 = vadd.f32 %v193_v62, %v192_v54  ;;  %v204_v5 = vmul.f32 0.125, %v154_v59  ;;  %v205_v6 = vmul.f32 0.125, %v161_v60 }
  0x3f   :  { %v181_v7 = vrot.slane %v180_v0, 1  ;;  %v188_v8 = vrot.slane %v187_v1, 1  ;;  %v200_v9 = vrot.slane %v199_v2, 2  ;;  %v206_v10 = vmul.f32 0.125, %v168_v63  ;;  %p332_p4 = por %p331_p3, %p330_p2 }
  0x40   :  { %v195_v11 = vrot.slane %v194_v4, 1  ;;  %v207_v12 = vmul.f32 0.125, %v175_v3  ;;  %v220_v13 = vsel %vm124_vm1, %v205_v6, %v204_v5 }
  0x41   :  { %v182_v14 = vadd.f32 %v181_v7, %v180_v0  ;;  %v189_v15 = vadd.f32 %v188_v8, %v187_v1  ;;  %v201_v16 = vadd.f32 %v200_v9, %v199_v2  ;;  %v221_v17 = vsel %vm126_vm2, %v206_v10, %v220_v13  ;;  %p333_p5 = pnand %p332_p4, %p326_p1 }
  0x42   :  { %v196_v18 = vadd.f32 %v195_v11, %v194_v4  ;;  %v222_v19 = vsel %vm128_vm3, %v207_v12, %v221_v17 }
  0x43   :  { %v202_v20 = vrot.slane %v201_v16, 1  ;;  %v208_v21 = vmul.f32 0.125, %v182_v14  ;;  %v209_v22 = vmul.f32 0.125, %v189_v15 }
  0x44   :  { %v210_v23 = vmul.f32 0.125, %v196_v18 }
  0x45   :  { %v203_v24 = vadd.f32 %v202_v20, %v201_v16  ;;  %v223_v25 = vsel %vm130_vm4, %v208_v21, %v222_v19 }
  0x46   :  { %v224_v26 = vsel %vm132_vm5, %v209_v22, %v223_v25 }
  0x47   :  { %v211_v27 = vmul.f32 0.125, %v203_v24  ;;  %v225_v28 = vsel %vm134_vm6, %v210_v23, %v224_v26 }
  0x49   :  { %v226_v29 = vsel %vm136_vm7, %v211_v27, %v225_v28 }
  0x4a   :  { %228 = vst.msk [vmem:[#allocation8] sm:$0xff] %vm51_vm0, %v226_v29 }
  0x4b   :  { %336 = shalt.err (!%p333_p5)
}
  0x4c   :  { %248 = dma.vmem_to_hbm [thread:$0]  %s246_s27, 128, %s426_s3, [#allocation9]  }
  0x4d   :  { %349 = dma.done.wait [#allocation4], 128  }
  0x4e   :  { %350 = vsyncadd [#allocation4], 4294967168 }
  0x4f   :  { %351 = dma.done.wait [#allocation9], 128  }
  0x50   :  { %352 = vsyncadd [#allocation9], 4294967168 }
  0x51   :  { %255 = vsyncpa [#allocation3], 1 }
  0x52   :  { %256 = vsyncpa [#allocation6], 1 }
  0x53   :  { %257 = vsyncpa [#allocation4], 1 }
  0x54   :  { %258 = vsyncpa [#allocation9], 1 }

</bundles_post_ra>
